<compile_context>
chip_gen: v7x
topology: tpu7x:2x2x1
jax: 0.10.0
libtpu: 0.0.40
codegen_flags: <defaults>
</compile_context>

<pallas_src>
import jax
import jax.numpy as jnp
from jax.experimental import pallas as pl
from jax.experimental.pallas import tpu as pltpu

LANE = 128
SUBLANE = 8


def _round_up(x, m):
    return ((x + m - 1) // m) * m


def _cdiv(a, b):
    return (a + b - 1) // b


def _vmem_capacity_bytes():
    try:
        return int(pltpu.get_tpu_info().vmem_capacity_bytes)
    except Exception:
        return 64 * 1024 * 1024  # conservative (v7x per-TensorCore)


def _choose_block_m(M, per_row_bytes, fixed_bytes, budget_bytes):
    """Largest block_m (multiple of 8, >=16 preferred) fitting the VMEM budget."""
    if fixed_bytes > budget_bytes:
        # TODO(synk): fall back to a K-tiled accumulator kernel here.
        raise ValueError(
            "POSProbe weights do not fit the VMEM budget; a K-tiled kernel is "
            f"required (weights={fixed_bytes} B, budget={budget_bytes} B).")
    cap = _round_up(max(M, SUBLANE), SUBLANE)
    candidates = [bm for bm in (1024, 512, 256, 128, 64, 32, 16) if bm <= cap]
    if not candidates:
        candidates = [cap]                      # M <= 8: single tiny block
    block_m = candidates[-1]
    for bm in candidates:
        if fixed_bytes + bm * per_row_bytes <= budget_bytes:
            block_m = bm
            break
    # v7x has 2 TensorCores; make sure the "parallel" M axis has >= 2 steps
    # whenever the problem is big enough to split.
    while block_m > 16 and _cdiv(M, block_m) < 2:
        block_m //= 2
    return block_m


# ----------------------------- kernels -------------------------------------


def _linear_kernel(x_ref, w_ref, b_ref, o_ref):
    # x_ref: (bm, R) in x's dtype; w_ref: (R, Pp) bf16 (full-array VMEM);
    # b_ref: (1, Pp) f32 (full-array VMEM); o_ref: (bm, Pp).
    x = x_ref[...].astype(w_ref.dtype)          # per-tile cast (free under MXU/DMA)
    acc = jnp.dot(x, w_ref[...], preferred_element_type=jnp.float32)
    o_ref[...] = (acc + b_ref[...]).astype(o_ref.dtype)


def _mlp_kernel(x_ref, w1_ref, b1_ref, w2_ref, b2_ref, o_ref):
    # x_ref: (bm, R); w1: (R, Hp); b1: (1, Hp); w2: (Hp, Pp); b2: (1, Pp).
    x = x_ref[...].astype(w1_ref.dtype)
    h = jnp.dot(x, w1_ref[...], preferred_element_type=jnp.float32)
    h = jnp.maximum(h + b1_ref[...], 0.0)
    acc = jnp.dot(h.astype(w2_ref.dtype), w2_ref[...],
                  preferred_element_type=jnp.float32)
    o_ref[...] = (acc + b2_ref[...]).astype(o_ref.dtype)


# ----------------------------- wrappers -------------------------------------

_VMEM_FULL_SPEC = pl.BlockSpec(memory_space=pltpu.MemorySpace.VMEM)


def _pallas_linear(x2d, w, b, *, out_dtype):
    M, R = x2d.shape
    _, P_pad = w.shape

    in_b = jnp.dtype(x2d.dtype).itemsize
    w_b = jnp.dtype(w.dtype).itemsize
    out_b = jnp.dtype(out_dtype).itemsize

    cap = _vmem_capacity_bytes()
    # double-buffered x/out blocks + in-kernel bf16 x copy + f32 accumulator
    per_row = 2 * R * in_b + 2 * P_pad * out_b + R * 2 + P_pad * 4
    fixed = R * P_pad * w_b + P_pad * 4        # single-buffered resident w, b
    block_m = _choose_block_m(M, per_row, fixed, int(0.40 * cap))

    cost = pl.CostEstimate(
        flops=2 * M * R * P_pad,
        transcendentals=0,
        bytes_accessed=(M * R * in_b + R * P_pad * w_b
                        + P_pad * 4 + M * P_pad * out_b))

    return pl.pallas_call(
        _linear_kernel,
        out_shape=jax.ShapeDtypeStruct((M, P_pad), out_dtype),
        grid_spec=pltpu.PrefetchScalarGridSpec(
            num_scalar_prefetch=0,
            grid=(_cdiv(M, block_m),),
            in_specs=[
                pl.BlockSpec((block_m, R), lambda i: (i, 0)),
                _VMEM_FULL_SPEC,   # w  (resident, single copy)
                _VMEM_FULL_SPEC,   # b
            ],
            out_specs=pl.BlockSpec((block_m, P_pad), lambda i: (i, 0)),
        ),
        compiler_params=pltpu.CompilerParams(
            dimension_semantics=("parallel",),
            vmem_limit_bytes=int(0.85 * cap)),
        cost_estimate=cost,
    )(x2d, w, b)


def _pallas_mlp(x2d, w1, b1, w2, b2, *, out_dtype):
    M, R = x2d.shape
    _, H_pad = w1.shape
    _, P_pad = w2.shape

    in_b = jnp.dtype(x2d.dtype).itemsize
    w_b = jnp.dtype(w1.dtype).itemsize
    out_b = jnp.dtype(out_dtype).itemsize

    cap = _vmem_capacity_bytes()
    # double-buffered x/out + bf16 x copy + f32/bf16 hidden + f32 accumulator
    per_row = (2 * R * in_b + 2 * P_pad * out_b
               + R * 2 + H_pad * 4 + H_pad * 2 + P_pad * 4)
    fixed = (R * H_pad + H_pad * P_pad) * w_b + (H_pad + P_pad) * 4
    block_m = _choose_block_m(M, per_row, fixed, int(0.40 * cap))

    cost = pl.CostEstimate(
        flops=2 * M * R * H_pad + 2 * M * H_pad * P_pad,
        transcendentals=0,
        bytes_accessed=(M * R * in_b
                        + (R * H_pad + H_pad * P_pad) * w_b
                        + (H_pad + P_pad) * 4
                        + M * P_pad * out_b))

    return pl.pallas_call(
        _mlp_kernel,
        out_shape=jax.ShapeDtypeStruct((M, P_pad), out_dtype),
        grid_spec=pltpu.PrefetchScalarGridSpec(
            num_scalar_prefetch=0,
            grid=(_cdiv(M, block_m),),
            in_specs=[
                pl.BlockSpec((block_m, R), lambda i: (i, 0)),
                _VMEM_FULL_SPEC,   # w1
                _VMEM_FULL_SPEC,   # b1
                _VMEM_FULL_SPEC,   # w2
                _VMEM_FULL_SPEC,   # b2
            ],
            out_specs=pl.BlockSpec((block_m, P_pad), lambda i: (i, 0)),
        ),
        compiler_params=pltpu.CompilerParams(
            dimension_semantics=("parallel",),
            vmem_limit_bytes=int(0.85 * cap)),
        cost_estimate=cost,
    )(x2d, w1, b1, w2, b2)


# ------------------------ POSProbe module (JAX) -----------------------------


class POSProbe:
    """JAX/Pallas port of the PyTorch POSProbe.

    Parameters follow the PyTorch nn.Linear default init
    U(-1/sqrt(fan_in), 1/sqrt(fan_in)). Weights are stored transposed
    (in, out); kernel copies are zero-padded to lane-dense 128-wide outputs
    and cast to `compute_dtype` (default bf16). Matmuls accumulate in f32 and
    bias/ReLU run in f32; pass compute_dtype=jnp.float32 for strict parity.
    """

    def __init__(self, repr_size, pos_size, hidden_size=0, dropout=0.0,
                 dtype=jnp.float32, compute_dtype=jnp.bfloat16, seed=0):
        self.repr_size = repr_size
        self.pos_size = pos_size
        self.hidden_size = hidden_size
        self.dropout = dropout                 # identity at inference
        self.dtype = dtype
        self.compute_dtype = compute_dtype

        key = jax.random.PRNGKey(seed)
        p_pad = _round_up(pos_size, LANE)

        def init_linear(key, fan_in, fan_out):
            kw, kb = jax.random.split(key)
            bound = 1.0 / (fan_in ** 0.5)
            w = jax.random.uniform(kw, (fan_in, fan_out), dtype,
                                   minval=-bound, maxval=bound)
            b = jax.random.uniform(kb, (fan_out,), dtype,
                                   minval=-bound, maxval=bound)
            return w, b

        def pad_wb(w, b, out_pad, in_pad=None):
            fi, fo = w.shape
            ip = fi if in_pad is None else in_pad
            wp = jnp.zeros((ip, out_pad), dtype).at[:fi, :fo].set(w)
            bp = jnp.zeros((1, out_pad), dtype).at[0, :fo].set(b)
            return wp.astype(compute_dtype), bp.astype(jnp.float32)

        if hidden_size == 0:
            self.w, self.b = init_linear(key, repr_size, pos_size)
            self.w_k, self.b_k = pad_wb(self.w, self.b, p_pad)
        else:
            h_pad = _round_up(hidden_size, LANE)
            k1, k2 = jax.random.split(key)
            self.w1, self.b1 = init_linear(k1, repr_size, hidden_size)
            self.w2, self.b2 = init_linear(k2, hidden_size, pos_size)
            self.w1_k, self.b1_k = pad_wb(self.w1, self.b1, h_pad)
            self.w2_k, self.b2_k = pad_wb(self.w2, self.b2, p_pad, in_pad=h_pad)

    def __call__(self, x):
        # x: (..., repr_size)  ->  (..., pos_size)
        lead = x.shape[:-1]
        out_dtype = x.dtype
        x2d = x.reshape(-1, self.repr_size)          # no wrapper-side cast/pad
        if self.hidden_size == 0:
            y = _pallas_linear(x2d, self.w_k, self.b_k, out_dtype=out_dtype)
        else:
            y = _pallas_mlp(x2d, self.w1_k, self.b1_k, self.w2_k, self.b2_k,
                            out_dtype=out_dtype)
        # TODO(synk): downstream consumers could read the padded (M, P_pad)
        # slab directly and fuse this slice away.
        return y[:, :self.pos_size].reshape(*lead, self.pos_size)

    # Pure-JAX f32 reference for correctness checking.
    def reference(self, x):
        if self.hidden_size == 0:
            return x @ self.w + self.b
        h = jnp.maximum(x @ self.w1 + self.b1, 0.0)
        return h @ self.w2 + self.b2


# --------------------------------- main --------------------------------------


if __name__ == "__main__":
    key = jax.random.PRNGKey(0)

    batch, seq, repr_size, pos_size, hidden = 2, 8, 32, 16, 32
    x = jax.random.normal(key, (batch, seq, repr_size), dtype=jnp.float32)

    # Variant 1: hidden_size == 0 (single Linear).
    probe0 = POSProbe(repr_size, pos_size, hidden_size=0, seed=0)
    y0 = jax.block_until_ready(probe0(x))
    ref0 = probe0.reference(x)
    assert y0.shape == (batch, seq, pos_size)
    assert jnp.allclose(y0, ref0, atol=5e-2, rtol=5e-2), \
        float(jnp.max(jnp.abs(y0 - ref0)))

    # Variant 2: hidden_size > 0 (Linear -> ReLU -> Linear, fused in one kernel).
    probe1 = POSProbe(repr_size, pos_size, hidden_size=hidden, seed=1)
    y1 = jax.block_until_ready(probe1(x))
    ref1 = probe1.reference(x)
    assert y1.shape == (batch, seq, pos_size)
    assert jnp.allclose(y1, ref1, atol=5e-2, rtol=5e-2), \
        float(jnp.max(jnp.abs(y1 - ref1)))

    # Variant 3: M not a multiple of block_m / 8 (exercises the partial last
    # block along M; no wrapper-side padding pass anymore).
    x_odd = jax.random.normal(jax.random.PRNGKey(7), (4, 33, repr_size),
                              dtype=jnp.float32)
    y2 = jax.block_until_ready(probe1(x_odd))
    ref2 = probe1.reference(x_odd)
    assert y2.shape == (4, 33, pos_size)
    assert jnp.allclose(y2, ref2, atol=5e-2, rtol=5e-2), \
        float(jnp.max(jnp.abs(y2 - ref2)))

    print("KERNEL_OK")
</pallas_src>

<mosaic_0001>
module attributes {stable_mosaic.version = 11 : i64} {
  func.func @_linear_kernel(%arg0: i32, %arg1: memref<16x32xf32, #tpu.memory_space<vmem>>, %arg2: memref<32x128xbf16, #tpu.memory_space<vmem>>, %arg3: memref<1x128xf32, #tpu.memory_space<vmem>>, %arg4: memref<16x128xf32, #tpu.memory_space<vmem>>) attributes {dimension_semantics = [#tpu.dimension_semantics<parallel>], iteration_bounds = array<i64: 1>, scalar_prefetch = 0 : i64, scratch_operands = 0 : i64, tpu.core_type = #tpu.core_type<tc>, window_params = [{transform_indices = @transform_0, window_bounds = array<i64: 16, 32>}, {pipeline_mode = #tpu.pipeline_mode<synchronous>, transform_indices = @transform_1, window_bounds = array<i64: 32, 128>}, {pipeline_mode = #tpu.pipeline_mode<synchronous>, transform_indices = @transform_2, window_bounds = array<i64: 1, 128>}, {transform_indices = @transform_3, window_bounds = array<i64: 16, 128>}]} {
    %c0 = arith.constant 0 : index
    %c0_0 = arith.constant 0 : index
    %0 = vector.load %arg1[%c0, %c0_0] : memref<16x32xf32, #tpu.memory_space<vmem>>, vector<16x32xf32>
    %1 = arith.truncf %0 : vector<16x32xf32> to vector<16x32xbf16>
    %c0_1 = arith.constant 0 : index
    %c0_2 = arith.constant 0 : index
    %2 = vector.load %arg2[%c0_1, %c0_2] : memref<32x128xbf16, #tpu.memory_space<vmem>>, vector<32x128xbf16>
    %cst = arith.constant dense<0.000000e+00> : vector<16x128xf32>
    %3 = tpu.matmul %1, %2, %cst {dimension_numbers = #tpu.dot_dimension_numbers<[1], [0], [0], [1], [0, 0, 1, 1], [], []>} : vector<16x32xbf16>, vector<32x128xbf16>, vector<16x128xf32> -> vector<16x128xf32>
    %c0_3 = arith.constant 0 : index
    %c0_4 = arith.constant 0 : index
    %4 = vector.load %arg3[%c0_3, %c0_4] : memref<1x128xf32, #tpu.memory_space<vmem>>, vector<1x128xf32>
    %5 = vector.broadcast %4 : vector<1x128xf32> to vector<16x128xf32>
    %6 = arith.addf %3, %5 : vector<16x128xf32>
    %c0_5 = arith.constant 0 : index
    %c0_6 = arith.constant 0 : index
    %7 = vector.load %arg4[%c0_5, %c0_6] : memref<16x128xf32, #tpu.memory_space<vmem>>, vector<16x128xf32>
    tpu.vector_store %arg4[%c0_5, %c0_6], %6 {strides = array<i32>} : memref<16x128xf32, #tpu.memory_space<vmem>>, vector<16x128xf32>,
    return
  }
  func.func @transform_0(%arg0: i32) -> (i32, i32) {
    %c0_i32 = arith.constant 0 : i32
    %c0_i32_0 = arith.constant 0 : i32
    return %arg0, %c0_i32 : i32, i32
  }
  func.func @transform_1(%arg0: i32) -> (i32, i32) {
    %c0_i32 = arith.constant 0 : i32
    %c0_i32_0 = arith.constant 0 : i32
    %c0_i32_1 = arith.constant 0 : i32
    return %c0_i32, %c0_i32_0 : i32, i32
  }
  func.func @transform_2(%arg0: i32) -> (i32, i32) {
    %c0_i32 = arith.constant 0 : i32
    %c0_i32_0 = arith.constant 0 : i32
    %c0_i32_1 = arith.constant 0 : i32
    return %c0_i32, %c0_i32_0 : i32, i32
  }
  func.func @transform_3(%arg0: i32) -> (i32, i32) {
    %c0_i32 = arith.constant 0 : i32
    %c0_i32_0 = arith.constant 0 : i32
    return %arg0, %c0_i32 : i32, i32
  }
}

</mosaic_0001>

<bundles_post_ra>
// kernel: tpu_custom_call.1
= control target key start
LH: loop header
LB: loop body
LE: loop exit
PB: predicated region body
PF: predicated region fallthrough
CT: control target
= control target key end

     0   :  { %8 = vsyncpa [#allocation3], 0  ;;  %s307_s0 = inlined_call_operand.hbm [shape: f32[16,32], index: 0, kind: input, shape index: {}]   ;;  %s308_s1 = inlined_call_operand.hbm [shape: bf16[32,128], index: 1, kind: input, shape index: {}]   ;;  %s309_s2 = inlined_call_operand.vmem [shape: f32[1,128], index: 2, kind: input, shape index: {}]   ;;  %s310_s3 = inlined_call_operand.hbm [shape: f32[16,128], index: 3, kind: output, shape index: {}]  }
   0x1   :  { %9 = vsyncpa [#allocation6], 0 }
   0x2   :  { %10 = vsyncpa [#allocation4], 0  ;;  %s233_s12 = smov [#allocation2]   ;;  %s161_s16 = scalar_lea.hbm %s307_s0, 256 }
   0x3   :  { %s16_s13 = sshll.u32 %s233_s12, 4  ;;  %p162_p0 = scmp.ne.s32.totalorder %s307_s0, %s161_s16  ;;  %s17_s13 = int_to_ptr.vmem [resolvable:$true] %s16_s13 }
   0x4   :  { %p165_p1 = scmp.lt.u32.totalorder %s161_s16, %s307_s0 }
   0x6   :  { %p167_p2 = pnand %p165_p1, %p162_p0 }
   0x8   :  { %170 = shalt.err (!%p167_p2)
}
   0x9   :  { %s171_s21 = scalar_lea.vmem %s17_s13, 256  ;;  %p176_p4 = scmp.lt.s32.totalorder %s17_s13, %s17_s13 }
   0xa   :  { %p172_p3 = scmp.ne.s32.totalorder %s17_s13, %s171_s21  ;;  %p177_p5 = scmp.lt.s32.totalorder %s171_s21, %s171_s21 }
   0xc   :  { %p178_p6 = por %p177_p5, %p176_p4 }
   0xe   :  { %p179_p7 = pnand %p178_p6, %p172_p3 }
  0x10   :  { %182 = shalt.err (!%p179_p7)
}
  0x11   :  { %s234_s22 = smov 128   ;;  %s235_s23 = smov 8  }
  0x12   :  { %22 = dma.hbm_to_vmem [thread:$0]  %s307_s0, 256, %s17_s13, [#allocation3], %s234_s22, %s234_s22, %s235_s23  }
  0x13   :  { %s236_s26 = smov [#allocation5]   ;;  %s183_s30 = scalar_lea.hbm %s308_s1, 256 }
  0x14   :  { %s28_s27 = sshll.u32 %s236_s26, 4  ;;  %p184_p8 = scmp.ne.s32.totalorder %s308_s1, %s183_s30  ;;  %s29_s27 = int_to_ptr.vmem [resolvable:$true] %s28_s27 }
  0x15   :  { %p187_p9 = scmp.lt.u32.totalorder %s183_s30, %s308_s1 }
  0x17   :  { %p189_p10 = pnand %p187_p9, %p184_p8 }
  0x19   :  { %192 = shalt.err (!%p189_p10)
}
  0x1a   :  { %s193_s8 = scalar_lea.vmem %s29_s27, 256  ;;  %p198_p12 = scmp.lt.s32.totalorder %s29_s27, %s29_s27 }
  0x1b   :  { %p194_p11 = scmp.ne.s32.totalorder %s29_s27, %s193_s8  ;;  %p199_p13 = scmp.lt.s32.totalorder %s193_s8, %s193_s8 }
  0x1d   :  { %p200_p0 = por %p199_p13, %p198_p12 }
  0x1f   :  { %p201_p1 = pnand %p200_p0, %p194_p11 }
  0x21   :  { %204 = shalt.err (!%p201_p1)
}
  0x22   :  { %s237_s0 = smov 64   ;;  %s238_s9 = smov 4  }
  0x23   :  { %34 = dma.hbm_to_vmem [thread:$0]  %s308_s1, 256, %s29_s27, [#allocation6], %s237_s0, %s237_s0, %s238_s9  }
  0x24   :  { %227 = dma.done.wait [#allocation3], 256  }
  0x25   :  { %228 = vsyncadd [#allocation3], 4294967040 }
  0x26   :  { %229 = dma.done.wait [#allocation6], 256  }
  0x27   :  { %230 = vsyncadd [#allocation6], 4294967040  ;;  %v239_v0 = vmov 0.0   ;;  %vm240_vm0 = vmmov 0   ;;  %v159_v1 = vld [vmem:[#allocation5] sm:$0xff]   ;;  %v160_v2 = vld [vmem:[#allocation5 + $0x8] sm:$0xff]  }
  0x28   :  { %142 = vmatprep.subr.bf16.mxu0 %v239_v0  ;;  %146 = vmatprep.mubr.msk.bf16.mxu0 %vm240_vm0, %v239_v0  ;;  %v44_v3 = vld [vmem:[#allocation2] sm:$0xff]  ;;  %v45_v4 = vld [vmem:[#allocation2 + $0x8] sm:$0xff]  ;;  %vm70_vm1 = vcmask 261120   ;;  %s241_s13 = smov [#allocation7]  }
  0x29   :  { %143 = vmatpush3.bf16.msra.mxu0 %v159_v1  ;;  %v46_v5 = vpack.c.bf16 %v45_v4, %v44_v3  ;;  %v135_v6 = vld [vmem:[%s309_s2] ss:$0 sm:$0xff]  ;;  %s122_s14 = sshll.u32 %s241_s13, 4  ;;  %s123_s14 = int_to_ptr.vmem [resolvable:$true] %s122_s14 }
  0x2a   :  { %144 = vmatprep.subr.bf16.mxu0 %v239_v0  ;;  %s205_s15 = scalar_lea.vmem %s123_s14, 256  ;;  %p210_p3 = scmp.lt.s32.totalorder %s123_s14, %s123_s14 }
  0x2b   :  { %p206_p2 = scmp.ne.s32.totalorder %s123_s14, %s205_s15  ;;  %p211_p4 = scmp.lt.s32.totalorder %s205_s15, %s205_s15 }
  0x2d   :  { %145 = vmatpush3.bf16.msra.mxu0 %v160_v2  ;;  %p212_p5 = por %p211_p4, %p210_p3 }
  0x2f   :  { %p213_p6 = pnand %p212_p5, %p206_p2 }
  0x30   :  { %147 = vmatmul.mubr.msk.bf16.vlgmr.msra.gmra.mrb[0].mxu0 %vm70_vm1, %v46_v5 }
 0x103   :  { %v108_v7 = vpop.f32.mrb[0].mxu0 }
 0x104   :  { %v109_v8 = vadd.f32 %v135_v6, %v108_v7  ;;  %v148_v9 = vpop.f32.mrb[1].mxu0 }
 0x105   :  { %v111_v10 = vpop.f32.mrb[2].mxu0 }
 0x106   :  { %115 = vst [vmem:[#allocation7] sm:$0xff] %v109_v8  ;;  %v112_v11 = vadd.f32 %v135_v6, %v111_v10  ;;  %v149_v12 = vpop.f32.mrb[3].mxu0 }
 0x108   :  { %116 = vst [vmem:[#allocation7 + $0x8] sm:$0xff] %v112_v11 }
 0x109   :  { %216 = shalt.err (!%p213_p6)
}
 0x10a   :  { %s217_s17 = scalar_lea.hbm %s310_s3, 256 }
 0x10b   :  { %p218_p7 = scmp.ne.s32.totalorder %s310_s3, %s217_s17  ;;  %p221_p8 = scmp.lt.u32.totalorder %s217_s17, %s310_s3 }
 0x10d   :  { %p223_p9 = pnand %p221_p8, %p218_p7 }
 0x10f   :  { %226 = shalt.err (!%p223_p9)
}
 0x110   :  { %128 = dma.vmem_to_hbm [thread:$0]  %s123_s14, 256, %s310_s3, [#allocation4], %s234_s22, %s234_s22, %s235_s23  }
 0x111   :  { %231 = dma.done.wait [#allocation4], 256  }
 0x112   :  { %232 = vsyncadd [#allocation4], 4294967040 }
 0x113   :  { %132 = vsyncpa [#allocation3], 1 }
 0x114   :  { %133 = vsyncpa [#allocation6], 1 }
 0x115   :  { %134 = vsyncpa [#allocation4], 1 }

</bundles_post_ra>
